<compile_context>
chip_gen: v5e
topology: v5e:2x2
jax: 0.10.0
libtpu: 0.0.40
codegen_flags: <defaults>
</compile_context>

<pallas_src>
import functools

import jax
import jax.numpy as jnp
import numpy as np
from jax import lax
from jax.experimental import pallas as pl
from jax.experimental.pallas import tpu as pltpu


def mha_out_kernel(q_ref, k_ref, v_ref, wo_t_ref, bo_ref, o_ref, *, scale):
    """Multi-head attention + fused output projection for one (batch, query-tile).

    q_ref: (H, TN, Dh)   k_ref/v_ref: (H, M, Dh)   wo_t_ref: (D, D)   bo_ref: (1, D)
    o_ref: (TN, D)
    """
    num_heads = q_ref.shape[0]

    head_outs = []
    for h in range(num_heads):                      # static unroll over heads
        qh = q_ref[h]                               # (TN, Dh) — leading-axis index, no relayout
        kh = k_ref[h]                               # (M,  Dh)
        vh = v_ref[h]                               # (M,  Dh)

        # (TN, Dh) x (M, Dh) contracted on Dh -> (TN, M); f32 accumulation on the MXU.
        s = lax.dot_general(qh, kh, (((1,), (1,)), ((), ())),
                            preferred_element_type=jnp.float32) * scale
        s = s - jnp.max(s, axis=-1, keepdims=True)
        p = jnp.exp(s)
        inv = pl.reciprocal(jnp.sum(p, axis=-1, keepdims=True), approx=False)  # EUP, not VALU div
        oh = jnp.dot(p.astype(vh.dtype), vh,
                     preferred_element_type=jnp.float32) * inv                 # (TN, Dh)
        head_outs.append(oh)

    # One full-D output projection instead of H folded Dh-wide contractions.
    concat = jnp.concatenate(head_outs, axis=-1)                               # (TN, D)
    y = jnp.dot(concat.astype(wo_t_ref.dtype), wo_t_ref[...],
                preferred_element_type=jnp.float32) + bo_ref[...]
    o_ref[...] = y.astype(o_ref.dtype)


def _vmem_capacity_bytes():
    try:
        return int(pltpu.get_tpu_info().vmem_capacity_bytes)
    except Exception:
        return 64 * 1024 * 1024   # conservative fallback (safe on every generation)


def _vmem_limit_bytes():
    # ~100 MiB on 128 MiB chips (v5e/v6e), ~54 MiB on 64 MiB chips (v7x).
    return min(100 * 1024 * 1024, int(0.85 * _vmem_capacity_bytes()))


def _choose_tile_n(n, target):
    """Largest multiple-of-8 divisor of n that is <= target, else the full axis."""
    if n <= target:
        return n
    for t in range(target, 7, -1):
        if t % 8 == 0 and n % t == 0:
            return t
    # No legal divisor: use the full axis (always satisfies the (8,128) rule).
    return n


def cross_attention(x, context, params, num_heads, *, compute_dtype=jnp.float32):
    """x: (B, N, D), context: (B, M, D). Returns (B, N, D) in x.dtype."""
    B, N, D = x.shape
    _, M, _ = context.shape
    dh = D // num_heads
    scale = float(dh) ** -0.5
    f32 = jnp.float32

    # --- Hoisted Q/K/V projections (batched XLA matmuls, f32 accumulation). ---
    def proj(inp, w, b):
        return (jnp.dot(inp.astype(compute_dtype), w.T.astype(compute_dtype),
                        preferred_element_type=f32) + b.astype(f32))

    q = proj(x, params["wq"], params["bq"])          # (B, N, D) f32
    k = proj(context, params["wk"], params["bk"])    # (B, M, D) f32
    v = proj(context, params["wv"], params["bv"])    # (B, M, D) f32

    # Head-major layout so the kernel indexes heads on a leading axis (no lane slicing).
    q_h = q.reshape(B, N, num_heads, dh).transpose(0, 2, 1, 3).astype(compute_dtype)  # (B,H,N,Dh)
    k_h = k.reshape(B, M, num_heads, dh).transpose(0, 2, 1, 3).astype(compute_dtype)  # (B,H,M,Dh)
    v_h = v.reshape(B, M, num_heads, dh).transpose(0, 2, 1, 3).astype(compute_dtype)  # (B,H,M,Dh)

    wo_t = params["wo"].T.astype(compute_dtype)      # (D, D)
    bo2 = params["bo"].reshape(1, D).astype(f32)     # (1, D)

    # Bigger tiles on 128 MiB chips, tighter on v7x.
    tile_target = 512 if _vmem_capacity_bytes() >= (96 << 20) else 256
    tile_n = _choose_tile_n(N, tile_target)
    grid = (B, N // tile_n)

    kernel = functools.partial(mha_out_kernel, scale=scale)
    const2d = lambda b, nt: (0, 0)

    return pl.pallas_call(
        kernel,
        out_shape=jax.ShapeDtypeStruct((B, N, D), x.dtype),
        grid_spec=pltpu.PrefetchScalarGridSpec(
            num_scalar_prefetch=0,
            grid=grid,
            in_specs=[
                pl.BlockSpec((pl.Squeezed(), num_heads, tile_n, dh),
                             lambda b, nt: (b, 0, nt, 0)),                 # Q heads (tiled on N)
                pl.BlockSpec((pl.Squeezed(), num_heads, M, dh),
                             lambda b, nt: (b, 0, 0, 0)),                  # K heads (per batch)
                pl.BlockSpec((pl.Squeezed(), num_heads, M, dh),
                             lambda b, nt: (b, 0, 0, 0)),                  # V heads (per batch)
                pl.BlockSpec((D, D), const2d),                             # Wo^T (constant)
                pl.BlockSpec((1, D), const2d),                             # bo   (constant)
            ],
            out_specs=pl.BlockSpec((pl.Squeezed(), tile_n, D),
                                   lambda b, nt: (b, nt, 0)),              # lane-dense output
        ),
        compiler_params=pltpu.CompilerParams(
            dimension_semantics=("parallel", "parallel"),
            vmem_limit_bytes=_vmem_limit_bytes()),
    )(q_h, k_h, v_h, wo_t, bo2)


def cross_attention_ref(x, context, params, num_heads):
    """Pure-JAX reference matching the PyTorch forward."""
    B, N, D = x.shape
    h = num_heads
    dh = D // h
    scale = dh ** (-0.5)
    q = (x @ params["wq"].T + params["bq"]).reshape(B, N, h, dh).transpose(0, 2, 1, 3)
    k = (context @ params["wk"].T + params["bk"]).reshape(B, -1, h, dh).transpose(0, 2, 1, 3)
    v = (context @ params["wv"].T + params["bv"]).reshape(B, -1, h, dh).transpose(0, 2, 1, 3)
    attn = jnp.einsum("bhnd,bhmd->bhnm", q, k) * scale
    attn = jax.nn.softmax(attn, axis=-1)
    out = jnp.einsum("bhnm,bhmd->bhnd", attn, v)
    out = out.transpose(0, 2, 1, 3).reshape(B, N, D)
    return out @ params["wo"].T + params["bo"]


if __name__ == "__main__":
    # Small shapes consistent with the module: dim=32, heads=4, seq=8, ctx=16.
    B, N, M, D, H = 2, 8, 16, 32, 4

    key = jax.random.PRNGKey(0)
    ks = jax.random.split(key, 10)
    x = jax.random.normal(ks[0], (B, N, D), dtype=jnp.float32)
    context = jax.random.normal(ks[1], (B, M, D), dtype=jnp.float32)

    params = {
        "wq": 0.2 * jax.random.normal(ks[2], (D, D), dtype=jnp.float32),
        "bq": 0.01 * jax.random.normal(ks[3], (D,), dtype=jnp.float32),
        "wk": 0.2 * jax.random.normal(ks[4], (D, D), dtype=jnp.float32),
        "bk": 0.01 * jax.random.normal(ks[5], (D,), dtype=jnp.float32),
        "wv": 0.2 * jax.random.normal(ks[6], (D, D), dtype=jnp.float32),
        "bv": 0.01 * jax.random.normal(ks[7], (D,), dtype=jnp.float32),
        "wo": 0.2 * jax.random.normal(ks[8], (D, D), dtype=jnp.float32),
        "bo": 0.01 * jax.random.normal(ks[9], (D,), dtype=jnp.float32),
    }

    ref = cross_attention_ref(x, context, params, num_heads=H)

    # f32 operand path: strict check against the PyTorch-equivalent reference.
    out = cross_attention(x, context, params, num_heads=H)
    out = jax.block_until_ready(out)
    np.testing.assert_allclose(np.asarray(out), np.asarray(ref), rtol=1e-4, atol=1e-4)

    # bf16 operand path (f32 accumulation) — the production setting for v6e/v7x MXU rate.
    out_bf16 = cross_attention(x, context, params, num_heads=H, compute_dtype=jnp.bfloat16)
    out_bf16 = jax.block_until_ready(out_bf16)
    np.testing.assert_allclose(np.asarray(out_bf16), np.asarray(ref), rtol=1e-1, atol=1e-1)

    print("KERNEL_OK")
</pallas_src>

<mosaic_0001>
module attributes {stable_mosaic.version = 11 : i64} {
  func.func @mha_out_kernel(%arg0: i32, %arg1: i32, %arg2: memref<1x4x8x8xf32, #tpu.memory_space<vmem>>, %arg3: memref<1x4x16x8xf32, #tpu.memory_space<vmem>>, %arg4: memref<1x4x16x8xf32, #tpu.memory_space<vmem>>, %arg5: memref<32x32xf32, #tpu.memory_space<vmem>>, %arg6: memref<1x32xf32, #tpu.memory_space<vmem>>, %arg7: memref<1x8x32xf32, #tpu.memory_space<vmem>>) attributes {dimension_semantics = [#tpu.dimension_semantics<parallel>, #tpu.dimension_semantics<parallel>], iteration_bounds = array<i64: 2, 1>, scalar_prefetch = 0 : i64, scratch_operands = 0 : i64, tpu.core_type = #tpu.core_type<tc>, window_params = [{transform_indices = @transform_0, window_bounds = array<i64: 1, 4, 8, 8>}, {transform_indices = @transform_1, window_bounds = array<i64: 1, 4, 16, 8>}, {transform_indices = @transform_2, window_bounds = array<i64: 1, 4, 16, 8>}, {pipeline_mode = #tpu.pipeline_mode<synchronous>, transform_indices = @transform_3, window_bounds = array<i64: 32, 32>}, {pipeline_mode = #tpu.pipeline_mode<synchronous>, transform_indices = @transform_4, window_bounds = array<i64: 1, 32>}, {transform_indices = @transform_5, window_bounds = array<i64: 1, 8, 32>}]} {
    %c0 = arith.constant 0 : index
    %c0_0 = arith.constant 0 : index
    %c0_1 = arith.constant 0 : index
    %c0_2 = arith.constant 0 : index
    %0 = vector.load %arg2[%c0, %c0_0, %c0_1, %c0_2] : memref<1x4x8x8xf32, #tpu.memory_space<vmem>>, vector<1x1x8x8xf32>
    %1 = vector.shape_cast %0 : vector<1x1x8x8xf32> to vector<8x8xf32>
    %c0_3 = arith.constant 0 : index
    %c0_4 = arith.constant 0 : index
    %c0_5 = arith.constant 0 : index
    %c0_6 = arith.constant 0 : index
    %2 = vector.load %arg3[%c0_3, %c0_4, %c0_5, %c0_6] : memref<1x4x16x8xf32, #tpu.memory_space<vmem>>, vector<1x1x16x8xf32>
    %3 = vector.shape_cast %2 : vector<1x1x16x8xf32> to vector<16x8xf32>
    %c0_7 = arith.constant 0 : index
    %c0_8 = arith.constant 0 : index
    %c0_9 = arith.constant 0 : index
    %c0_10 = arith.constant 0 : index
    %4 = vector.load %arg4[%c0_7, %c0_8, %c0_9, %c0_10] : memref<1x4x16x8xf32, #tpu.memory_space<vmem>>, vector<1x1x16x8xf32>
    %5 = vector.shape_cast %4 : vector<1x1x16x8xf32> to vector<16x8xf32>
    %cst = arith.constant dense<0.000000e+00> : vector<8x16xf32>
    %6 = tpu.matmul %1, %3, %cst {dimension_numbers = #tpu.dot_dimension_numbers<[1], [1], [0], [0], [0, 0, 1, 0], [], []>} : vector<8x8xf32>, vector<16x8xf32>, vector<8x16xf32> -> vector<8x16xf32>
    %cst_11 = arith.constant 0.353553385 : f32
    %7 = vector.broadcast %cst_11 : f32 to vector<8x16xf32>
    %8 = arith.mulf %6, %7 : vector<8x16xf32>
    %cst_12 = arith.constant dense<0xFF800000> : vector<8xf32>
    %9 = vector.multi_reduction <maximumf>, %8, %cst_12 [1] : vector<8x16xf32> to vector<8xf32>
    %10 = vector.shape_cast %9 : vector<8xf32> to vector<8x1xf32>
    %11 = vector.broadcast %10 : vector<8x1xf32> to vector<8x16xf32>
    %12 = arith.subf %8, %11 : vector<8x16xf32>
    %13 = math.exp %12 : vector<8x16xf32>
    %cst_13 = arith.constant dense<0.000000e+00> : vector<8xf32>
    %14 = vector.multi_reduction <add>, %13, %cst_13 [1] : vector<8x16xf32> to vector<8xf32>
    %15 = vector.shape_cast %14 : vector<8xf32> to vector<8x1xf32>
    %16 = tpu.reciprocal %15 : vector<8x1xf32> -> vector<8x1xf32>
    %cst_14 = arith.constant dense<0.000000e+00> : vector<8x8xf32>
    %17 = tpu.matmul %13, %5, %cst_14 {dimension_numbers = #tpu.dot_dimension_numbers<[1], [0], [0], [1], [0, 0, 1, 1], [], []>} : vector<8x16xf32>, vector<16x8xf32>, vector<8x8xf32> -> vector<8x8xf32>
    %18 = vector.broadcast %16 : vector<8x1xf32> to vector<8x8xf32>
    %19 = arith.mulf %17, %18 : vector<8x8xf32>
    %c0_15 = arith.constant 0 : index
    %c1 = arith.constant 1 : index
    %c0_16 = arith.constant 0 : index
    %c0_17 = arith.constant 0 : index
    %20 = vector.load %arg2[%c0_15, %c1, %c0_16, %c0_17] : memref<1x4x8x8xf32, #tpu.memory_space<vmem>>, vector<1x1x8x8xf32>
    %21 = vector.shape_cast %20 : vector<1x1x8x8xf32> to vector<8x8xf32>
    %c0_18 = arith.constant 0 : index
    %c1_19 = arith.constant 1 : index
    %c0_20 = arith.constant 0 : index
    %c0_21 = arith.constant 0 : index
    %22 = vector.load %arg3[%c0_18, %c1_19, %c0_20, %c0_21] : memref<1x4x16x8xf32, #tpu.memory_space<vmem>>, vector<1x1x16x8xf32>
    %23 = vector.shape_cast %22 : vector<1x1x16x8xf32> to vector<16x8xf32>
    %c0_22 = arith.constant 0 : index
    %c1_23 = arith.constant 1 : index
    %c0_24 = arith.constant 0 : index
    %c0_25 = arith.constant 0 : index
    %24 = vector.load %arg4[%c0_22, %c1_23, %c0_24, %c0_25] : memref<1x4x16x8xf32, #tpu.memory_space<vmem>>, vector<1x1x16x8xf32>
    %25 = vector.shape_cast %24 : vector<1x1x16x8xf32> to vector<16x8xf32>
    %cst_26 = arith.constant dense<0.000000e+00> : vector<8x16xf32>
    %26 = tpu.matmul %21, %23, %cst_26 {dimension_numbers = #tpu.dot_dimension_numbers<[1], [1], [0], [0], [0, 0, 1, 0], [], []>} : vector<8x8xf32>, vector<16x8xf32>, vector<8x16xf32> -> vector<8x16xf32>
    %cst_27 = arith.constant 0.353553385 : f32
    %27 = vector.broadcast %cst_27 : f32 to vector<8x16xf32>
    %28 = arith.mulf %26, %27 : vector<8x16xf32>
    %cst_28 = arith.constant dense<0xFF800000> : vector<8xf32>
    %29 = vector.multi_reduction <maximumf>, %28, %cst_28 [1] : vector<8x16xf32> to vector<8xf32>
    %30 = vector.shape_cast %29 : vector<8xf32> to vector<8x1xf32>
    %31 = vector.broadcast %30 : vector<8x1xf32> to vector<8x16xf32>
    %32 = arith.subf %28, %31 : vector<8x16xf32>
    %33 = math.exp %32 : vector<8x16xf32>
    %cst_29 = arith.constant dense<0.000000e+00> : vector<8xf32>
    %34 = vector.multi_reduction <add>, %33, %cst_29 [1] : vector<8x16xf32> to vector<8xf32>
    %35 = vector.shape_cast %34 : vector<8xf32> to vector<8x1xf32>
    %36 = tpu.reciprocal %35 : vector<8x1xf32> -> vector<8x1xf32>
    %cst_30 = arith.constant dense<0.000000e+00> : vector<8x8xf32>
    %37 = tpu.matmul %33, %25, %cst_30 {dimension_numbers = #tpu.dot_dimension_numbers<[1], [0], [0], [1], [0, 0, 1, 1], [], []>} : vector<8x16xf32>, vector<16x8xf32>, vector<8x8xf32> -> vector<8x8xf32>
    %38 = vector.broadcast %36 : vector<8x1xf32> to vector<8x8xf32>
    %39 = arith.mulf %37, %38 : vector<8x8xf32>
    %c0_31 = arith.constant 0 : index
    %c2 = arith.constant 2 : index
    %c0_32 = arith.constant 0 : index
    %c0_33 = arith.constant 0 : index
    %40 = vector.load %arg2[%c0_31, %c2, %c0_32, %c0_33] : memref<1x4x8x8xf32, #tpu.memory_space<vmem>>, vector<1x1x8x8xf32>
    %41 = vector.shape_cast %40 : vector<1x1x8x8xf32> to vector<8x8xf32>
    %c0_34 = arith.constant 0 : index
    %c2_35 = arith.constant 2 : index
    %c0_36 = arith.constant 0 : index
    %c0_37 = arith.constant 0 : index
    %42 = vector.load %arg3[%c0_34, %c2_35, %c0_36, %c0_37] : memref<1x4x16x8xf32, #tpu.memory_space<vmem>>, vector<1x1x16x8xf32>
    %43 = vector.shape_cast %42 : vector<1x1x16x8xf32> to vector<16x8xf32>
    %c0_38 = arith.constant 0 : index
    %c2_39 = arith.constant 2 : index
    %c0_40 = arith.constant 0 : index
    %c0_41 = arith.constant 0 : index
    %44 = vector.load %arg4[%c0_38, %c2_39, %c0_40, %c0_41] : memref<1x4x16x8xf32, #tpu.memory_space<vmem>>, vector<1x1x16x8xf32>
    %45 = vector.shape_cast %44 : vector<1x1x16x8xf32> to vector<16x8xf32>
    %cst_42 = arith.constant dense<0.000000e+00> : vector<8x16xf32>
    %46 = tpu.matmul %41, %43, %cst_42 {dimension_numbers = #tpu.dot_dimension_numbers<[1], [1], [0], [0], [0, 0, 1, 0], [], []>} : vector<8x8xf32>, vector<16x8xf32>, vector<8x16xf32> -> vector<8x16xf32>
    %cst_43 = arith.constant 0.353553385 : f32
    %47 = vector.broadcast %cst_43 : f32 to vector<8x16xf32>
    %48 = arith.mulf %46, %47 : vector<8x16xf32>
    %cst_44 = arith.constant dense<0xFF800000> : vector<8xf32>
    %49 = vector.multi_reduction <maximumf>, %48, %cst_44 [1] : vector<8x16xf32> to vector<8xf32>
    %50 = vector.shape_cast %49 : vector<8xf32> to vector<8x1xf32>
    %51 = vector.broadcast %50 : vector<8x1xf32> to vector<8x16xf32>
    %52 = arith.subf %48, %51 : vector<8x16xf32>
    %53 = math.exp %52 : vector<8x16xf32>
    %cst_45 = arith.constant dense<0.000000e+00> : vector<8xf32>
    %54 = vector.multi_reduction <add>, %53, %cst_45 [1] : vector<8x16xf32> to vector<8xf32>
    %55 = vector.shape_cast %54 : vector<8xf32> to vector<8x1xf32>
    %56 = tpu.reciprocal %55 : vector<8x1xf32> -> vector<8x1xf32>
    %cst_46 = arith.constant dense<0.000000e+00> : vector<8x8xf32>
    %57 = tpu.matmul %53, %45, %cst_46 {dimension_numbers = #tpu.dot_dimension_numbers<[1], [0], [0], [1], [0, 0, 1, 1], [], []>} : vector<8x16xf32>, vector<16x8xf32>, vector<8x8xf32> -> vector<8x8xf32>
    %58 = vector.broadcast %56 : vector<8x1xf32> to vector<8x8xf32>
    %59 = arith.mulf %57, %58 : vector<8x8xf32>
    %c0_47 = arith.constant 0 : index
    %c3 = arith.constant 3 : index
    %c0_48 = arith.constant 0 : index
    %c0_49 = arith.constant 0 : index
    %60 = vector.load %arg2[%c0_47, %c3, %c0_48, %c0_49] : memref<1x4x8x8xf32, #tpu.memory_space<vmem>>, vector<1x1x8x8xf32>
    %61 = vector.shape_cast %60 : vector<1x1x8x8xf32> to vector<8x8xf32>
    %c0_50 = arith.constant 0 : index
    %c3_51 = arith.constant 3 : index
    %c0_52 = arith.constant 0 : index
    %c0_53 = arith.constant 0 : index
    %62 = vector.load %arg3[%c0_50, %c3_51, %c0_52, %c0_53] : memref<1x4x16x8xf32, #tpu.memory_space<vmem>>, vector<1x1x16x8xf32>
    %63 = vector.shape_cast %62 : vector<1x1x16x8xf32> to vector<16x8xf32>
    %c0_54 = arith.constant 0 : index
    %c3_55 = arith.constant 3 : index
    %c0_56 = arith.constant 0 : index
    %c0_57 = arith.constant 0 : index
    %64 = vector.load %arg4[%c0_54, %c3_55, %c0_56, %c0_57] : memref<1x4x16x8xf32, #tpu.memory_space<vmem>>, vector<1x1x16x8xf32>
    %65 = vector.shape_cast %64 : vector<1x1x16x8xf32> to vector<16x8xf32>
    %cst_58 = arith.constant dense<0.000000e+00> : vector<8x16xf32>
    %66 = tpu.matmul %61, %63, %cst_58 {dimension_numbers = #tpu.dot_dimension_numbers<[1], [1], [0], [0], [0, 0, 1, 0], [], []>} : vector<8x8xf32>, vector<16x8xf32>, vector<8x16xf32> -> vector<8x16xf32>
    %cst_59 = arith.constant 0.353553385 : f32
    %67 = vector.broadcast %cst_59 : f32 to vector<8x16xf32>
    %68 = arith.mulf %66, %67 : vector<8x16xf32>
    %cst_60 = arith.constant dense<0xFF800000> : vector<8xf32>
    %69 = vector.multi_reduction <maximumf>, %68, %cst_60 [1] : vector<8x16xf32> to vector<8xf32>
    %70 = vector.shape_cast %69 : vector<8xf32> to vector<8x1xf32>
    %71 = vector.broadcast %70 : vector<8x1xf32> to vector<8x16xf32>
    %72 = arith.subf %68, %71 : vector<8x16xf32>
    %73 = math.exp %72 : vector<8x16xf32>
    %cst_61 = arith.constant dense<0.000000e+00> : vector<8xf32>
    %74 = vector.multi_reduction <add>, %73, %cst_61 [1] : vector<8x16xf32> to vector<8xf32>
    %75 = vector.shape_cast %74 : vector<8xf32> to vector<8x1xf32>
    %76 = tpu.reciprocal %75 : vector<8x1xf32> -> vector<8x1xf32>
    %cst_62 = arith.constant dense<0.000000e+00> : vector<8x8xf32>
    %77 = tpu.matmul %73, %65, %cst_62 {dimension_numbers = #tpu.dot_dimension_numbers<[1], [0], [0], [1], [0, 0, 1, 1], [], []>} : vector<8x16xf32>, vector<16x8xf32>, vector<8x8xf32> -> vector<8x8xf32>
    %78 = vector.broadcast %76 : vector<8x1xf32> to vector<8x8xf32>
    %79 = arith.mulf %77, %78 : vector<8x8xf32>
    %80 = tpu.concatenate %19, %39, %59, %79 in 1 : vector<8x8xf32>, vector<8x8xf32>, vector<8x8xf32>, vector<8x8xf32> -> vector<8x32xf32>
    %c0_63 = arith.constant 0 : index
    %c0_64 = arith.constant 0 : index
    %81 = vector.load %arg5[%c0_63, %c0_64] : memref<32x32xf32, #tpu.memory_space<vmem>>, vector<32x32xf32>
    %cst_65 = arith.constant dense<0.000000e+00> : vector<8x32xf32>
    %82 = tpu.matmul %80, %81, %cst_65 {dimension_numbers = #tpu.dot_dimension_numbers<[1], [0], [0], [1], [0, 0, 1, 1], [], []>} : vector<8x32xf32>, vector<32x32xf32>, vector<8x32xf32> -> vector<8x32xf32>
    %c0_66 = arith.constant 0 : index
    %c0_67 = arith.constant 0 : index
    %83 = vector.load %arg6[%c0_66, %c0_67] : memref<1x32xf32, #tpu.memory_space<vmem>>, vector<1x32xf32>
    %84 = vector.broadcast %83 : vector<1x32xf32> to vector<8x32xf32>
    %85 = arith.addf %82, %84 : vector<8x32xf32>
    %c0_68 = arith.constant 0 : index
    %c0_69 = arith.constant 0 : index
    %c0_70 = arith.constant 0 : index
    %86 = vector.load %arg7[%c0_68, %c0_69, %c0_70] : memref<1x8x32xf32, #tpu.memory_space<vmem>>, vector<1x8x32xf32>
    %87 = vector.shape_cast %86 : vector<1x8x32xf32> to vector<8x32xf32>
    %88 = vector.shape_cast %85 : vector<8x32xf32> to vector<1x8x32xf32>
    tpu.vector_store %arg7[%c0_68, %c0_69, %c0_70], %88 {strides = array<i32>} : memref<1x8x32xf32, #tpu.memory_space<vmem>>, vector<1x8x32xf32>,
    return
  }
  func.func @transform_0(%arg0: i32, %arg1: i32) -> (i32, i32, i32, i32) {
    %c0_i32 = arith.constant 0 : i32
    %c0_i32_0 = arith.constant 0 : i32
    %c0_i32_1 = arith.constant 0 : i32
    return %arg0, %c0_i32, %arg1, %c0_i32_0 : i32, i32, i32, i32
  }
  func.func @transform_1(%arg0: i32, %arg1: i32) -> (i32, i32, i32, i32) {
    %c0_i32 = arith.constant 0 : i32
    %c0_i32_0 = arith.constant 0 : i32
    %c0_i32_1 = arith.constant 0 : i32
    %c0_i32_2 = arith.constant 0 : i32
    return %arg0, %c0_i32, %c0_i32_0, %c0_i32_1 : i32, i32, i32, i32
  }
  func.func @transform_2(%arg0: i32, %arg1: i32) -> (i32, i32, i32, i32) {
    %c0_i32 = arith.constant 0 : i32
    %c0_i32_0 = arith.constant 0 : i32
    %c0_i32_1 = arith.constant 0 : i32
    %c0_i32_2 = arith.constant 0 : i32
    return %arg0, %c0_i32, %c0_i32_0, %c0_i32_1 : i32, i32, i32, i32
  }
  func.func @transform_3(%arg0: i32, %arg1: i32) -> (i32, i32) {
    %c0_i32 = arith.constant 0 : i32
    %c0_i32_0 = arith.constant 0 : i32
    %c0_i32_1 = arith.constant 0 : i32
    return %c0_i32, %c0_i32_0 : i32, i32
  }
  func.func @transform_4(%arg0: i32, %arg1: i32) -> (i32, i32) {
    %c0_i32 = arith.constant 0 : i32
    %c0_i32_0 = arith.constant 0 : i32
    %c0_i32_1 = arith.constant 0 : i32
    return %c0_i32, %c0_i32_0 : i32, i32
  }
  func.func @transform_5(%arg0: i32, %arg1: i32) -> (i32, i32, i32) {
    %c0_i32 = arith.constant 0 : i32
    %c0_i32_0 = arith.constant 0 : i32
    return %arg0, %arg1, %c0_i32 : i32, i32, i32
  }
}

</mosaic_0001>

<bundles_post_ra>
// kernel: tpu_custom_call.1
= control target key start
LH: loop header
LB: loop body
LE: loop exit
PB: predicated region body
PF: predicated region fallthrough
CT: control target
= control target key end

     0   :  { %10 = vsyncpa [#allocation3], 0  ;;  %s1205_s0 = inlined_call_operand.vmem [shape: f32[2,4,8,8], index: 0, kind: input, shape index: {}]   ;;  %s1206_s1 = inlined_call_operand.vmem [shape: f32[2,4,16,8], index: 1, kind: input, shape index: {}]   ;;  %s1207_s2 = inlined_call_operand.vmem [shape: f32[2,4,16,8], index: 2, kind: input, shape index: {}]   ;;  %s1208_s3 = inlined_call_operand.vmem [shape: f32[32,32], index: 3, kind: input, shape index: {}]   ;;  %s1209_s4 = inlined_call_operand.vmem [shape: f32[1,32], index: 4, kind: input, shape index: {}]   ;;  %s1210_s5 = inlined_call_operand.hbm [shape: f32[2,8,32], index: 5, kind: output, shape index: {}]  }
   0x1   :  { %12 = vsyncpa [#allocation3 + $0x1], 0  ;;  %s1030_s18 = smov 0   ;;  %s1032_s19 = smov 0  }
   0x2   :  { %s1034_s20 = smov 0   ;;  %s1036_s21 = smov 0  }
   0x3   :  { %s1038_s22 = smov 0   ;;  %s1040_s23 = smov 0  }
   0x4 LB: > { %s791_s24 = sadd.s32 4294967295, %s995_s23   ;;  %s792_s25 = sadd.s32 4294967294, %s995_s23   ;;  %s995_s23 = sphi %s1040_s23, %s18_s23   ;;  %s991_s22 = sphi %s1038_s22, %s1217_s22   ;;  %s987_s21 = sphi %s1036_s21, %s1216_s21   ;;  %s983_s20 = sphi %s1034_s20, %s1215_s20   ;;  %s979_s19 = sphi %s1032_s19, %s1214_s19   ;;  %s975_s18 = sphi %s1030_s18, %s1213_s18  }
   0x5   : > { %s30_s26 = sadd.s32 1, %s991_s22  ;;  %s161_s27 = sadd.s32 1, %s983_s20 }
   0x6   : > { %p32_p0 = scmp.ge.s32.totalorder %s30_s26, 2  ;;  %p171_p1 = scmp.ne.s32.totalorder %s983_s20, %s979_s19 }
   0x7   : > { %p172_p2 = scmp.eq.s32.totalorder %s791_s24, 1  ;;  %p177_p3 = scmp.ne.s32.totalorder %s979_s19, %s975_s18 }
   0x8   : > { %s1219_s26 = smov (%p32_p0, %s30_s26), 0  ;;  %p178_p5 = scmp.eq.s32.totalorder %s792_s25, 1 }
   0x9   : > { %p1070_p4 = por %p172_p2, %p171_p1  ;;  %s156_s29 = ssub.s32 %s991_s22, %s1219_s26 }
   0xa   : > { %p795_p6 = scmp.ge.s32.totalorder %s995_s23, 1  ;;  %p159_p7 = scmp.eq.s32.totalorder %s156_s29, 0 }
   0xb   : > { %p1077_p8 = por %p178_p5, %p177_p3  ;;  %p229_p9 = scmp.lt.s32.totalorder %s995_s23, 3 }
   0xc   : > { %s1083_s6 = scalar_select %p159_p7, %s983_s20, %s161_s27  }
   0xd   : > { %p230_p10 = pnand %p795_p6, %p229_p9 }
   0xe   : > { %p270_p11 = scmp.lt.s32.totalorder (!%p230_p10), %s987_s21, 1  ;;  %s997_s25 = smov (!%p230_p10), 8  }
   0xf   : > { %233 = sbr.rel (%p230_p10) target bundleno = 943 (0x3af), region = 40  ;;  %s998_s27 = smov (!%p230_p10), 16  }
  0x10   : > { %s999_s29 = smov (!%p230_p10), 24   ;;  %s836_s17 = sshll.u32 (!%p230_p10), %s987_s21, 3 }
  0x14   : > { %s271_s7 = scalar_select %p270_p11, %s987_s21, 1  ;;  %vm293_vm0 = vcmask 64512   ;;  %vm324_vm1 = vcmask 130048  }
  0x16   : > { %s840_s8 = sshll.u32 %s271_s7, 6  ;;  %s839_s12 = sshll.u32 %s271_s7, 5 }
  0x17   : > { %s1090_s11 = scalar_lea.vmem %s1206_s1, %s840_s8  ;;  %s1099_s15 = scalar_lea.vmem %s1205_s0, %s839_s12 }
  0x18   : > { %v290_v0 = vld [vmem:[%s1090_s11 + $0x8] sm:$0xff]  ;;  %v809_v1 = vld [vmem:[%s1090_s11 + $0x18] sm:$0xff]  ;;  %v289_v2 = vld [vmem:[%s1090_s11] sm:$0xff]  ;;  %s1113_s24 = scalar_lea.vmem %s1207_s2, %s840_s8 }
  0x19   : > { %803 = vmatpush.xpose.msk.msra.mxu0 %vm293_vm0, %v290_v0  ;;  %812 = vmatpush.xpose.msk.msra.mxu2 %vm293_vm0, %v809_v1  ;;  %v808_v3 = vld [vmem:[%s1090_s11 + $0x10] sm:$0xff]  ;;  %v288_v4 = vld [vmem:[%s1099_s15] sm:$0xff]  ;;  %v807_v5 = vld [vmem:[%s1099_s15 + $0x8] sm:$0xff] }
  0x1a   : > { %v292_v9 = vld [vmem:[%s1113_s24 + $0x8] sm:$0xff]  ;;  %v291_v10 = vld [vmem:[%s1113_s24] sm:$0xff]  ;;  %v827_v16 = vld [vmem:[%s1090_s11 + $0x38] sm:$0xff] }
  0x1b   : > { %365 = vmatpush.msra.mxu1 %v292_v9  ;;  %v818_v11 = vld [vmem:[%s1090_s11 + $0x28] sm:$0xff]  ;;  %v817_v13 = vld [vmem:[%s1090_s11 + $0x20] sm:$0xff]  ;;  %v826_v17 = vld [vmem:[%s1090_s11 + $0x30] sm:$0xff] }
  0x1c   : > { %v825_v18 = vld [vmem:[%s1099_s15 + $0x18] sm:$0xff]  ;;  %v816_v23 = vld [vmem:[%s1099_s15 + $0x10] sm:$0xff]  ;;  %v820_v39 = vld [vmem:[%s1113_s24 + $0x28] sm:$0xff]  ;;  %s267_s15 = sand.u32 1, %s979_s19  }
  0x1d   : > { %804 = vmatpush.xpose.msk.msra.mxu0 %vm293_vm0, %v289_v2  ;;  %813 = vmatpush.xpose.msk.msra.mxu2 %vm293_vm0, %v808_v3  ;;  %v811_v27 = vld [vmem:[%s1113_s24 + $0x18] sm:$0xff]  ;;  %v810_v29 = vld [vmem:[%s1113_s24 + $0x10] sm:$0xff]  ;;  %v819_v40 = vld [vmem:[%s1113_s24 + $0x20] sm:$0xff]  ;;  %s796_s16 = sshll.u32 %s267_s15, 3  ;;  %s677_s11 = scalar_lea.sflag [#allocation3], %s267_s15 }
  0x1e   : > { %366 = vmatpush.msra.mxu1 %v291_v10  ;;  %450 = vmatpush.msra.mxu3 %v811_v27  ;;  %v829_v41 = vld [vmem:[%s1113_s24 + $0x38] sm:$0xff]  ;;  %v828_v42 = vld [vmem:[%s1113_s24 + $0x30] sm:$0xff]  ;;  %s269_s8 = scalar_lea.vmem [#allocation2], %s796_s16  ;;  %s937_s16 = scalar_lea.hbm %s1210_s5, 16 }
  0x1f   : > { %s690_s9 = sshll.u32 %s269_s8, 4  ;;  %s691_s9 = int_to_ptr.vmem [resolvable:$true] %s690_s9 }
  0x20   : > { %805 = vmatmul.msk.f32.vlgmr.msra.gmra.mxu0 %vm293_vm0, %v288_v4  ;;  %814 = vmatmul.msk.f32.vlgmr.msra.gmra.mxu2 %vm293_vm0, %v807_v5 }
  0x21   : > { %821 = vmatpush.xpose.msk.msrb.mxu1 %vm293_vm0, %v818_v11  ;;  %830 = vmatpush.xpose.msk.msrb.mxu0 %vm293_vm0, %v827_v16 }
  0x22   : > { %451 = vmatpush.msra.mxu3 %v810_v29  ;;  %620 = vmatpush.msrb.mxu2 %v829_v41  ;;  %v645_v29 = vld [vmem:[%s1208_s3 + $0x10] sm:$0xff] }
  0x24   : > { %535 = vmatpush.msrb.mxu3 %v820_v39  ;;  %621 = vmatpush.msrb.mxu2 %v828_v42 }
  0x25   : > { %822 = vmatpush.xpose.msk.msrb.mxu1 %vm293_vm0, %v817_v13  ;;  %831 = vmatpush.xpose.msk.msrb.mxu0 %vm293_vm0, %v826_v17 }
  0x26   : > { %536 = vmatpush.msrb.mxu3 %v819_v40 }
  0x28   : > { %832 = vmatmul.msk.f32.vlgmr.msrb.gmra.mxu0 %vm293_vm0, %v825_v18 }
  0x9d   : > { %v320_v6 = vpop.f32.mrf.mxu0 }
  0x9e   : > { %v323_v7 = vmul.f32 0.35355338, %v320_v6 }
  0xa0   : > { %v325_v8 = vsel %vm324_vm1, %v323_v7, -inf }
  0xa1   : > { %326 = vmax.xlane.f32.xlu0 %v325_v8 }
  0xa3   : > { %v406_v12 = vpop.f32.mrf.mxu2 }
  0xa4   : > { %v409_v14 = vmul.f32 0.35355338, %v406_v12 }
  0xa5   : > { %v576_v34 = vpop.f32.mrf.mxu0 }
  0xa6   : > { %v410_v15 = vsel %vm324_vm1, %v409_v14, -inf  ;;  %v579_v36 = vmul.f32 0.35355338, %v576_v34 }
  0xa8   : > { %v580_v37 = vsel %vm324_vm1, %v579_v36, -inf }
  0xa9   : > { %411 = vmax.xlane.f32.xlu0 %v410_v15 }
 0x114   : > { %v327_v19 = vpop.xlane.xlu0 %326 }
 0x115   : > { %v328_v20 = vsub.f32 %v323_v7, %v327_v19 }
 0x117   : > { %v329_v21 = vmul.f32 1.442695, %v328_v20 }
 0x119   : > { %901 = vpow2.f32 %v329_v21 }
 0x11c   : > { %v412_v24 = vpop.xlane.xlu0 %411 }
 0x11d   : > { %v413_v25 = vsub.f32 %v409_v14, %v412_v24 }
 0x11f   : > { %v902_v22 = vpop.eup %901  ;;  %v414_v26 = vmul.f32 1.442695, %v413_v25 }
 0x120   : > { %806 = vmatmul.msk.f32.vlgmr.msra.gmra.mxu1 %vm324_vm1, %v902_v22  ;;  %v331_v38 = vsel %vm324_vm1, %v902_v22, 0.0 }
 0x121   : > { %903 = vpow2.f32 %v414_v26 }
 0x127   : > { %v904_v28 = vpop.eup %903 }
 0x128   : > { %823 = vmatmul.msk.f32.vlgmr.msrb.gmra.mxu1 %vm293_vm0, %v816_v23  ;;  %v416_v30 = vsel %vm324_vm1, %v904_v28, 0.0  ;;  %815 = vmatmul.msk.f32.vlgmr.msra.gmra.mxu3 %vm324_vm1, %v904_v28  ;;  %v646_v28 = vld [vmem:[%s1208_s3 + $0x18] sm:$0xff] }
 0x129   : > { %417 = vadd.xlane.f32.xlu2 %v416_v30  ;;  %667 = vmatpush.msra.mxu1 %v646_v28 }
 0x12b   : > { %668 = vmatpush.msra.mxu1 %v645_v29 }
 0x19c   : > { %v418_v44 = vpop.xlane.xlu2 %417 }
 0x19d   : > { %v1135_v31 = vpop.f32.mrf.mxu1  ;;  %905 = vrcp.f32 %v418_v44  ;;  %vm424_vm2 = vweird.f32 %v418_v44  ;;  %v430_v58 = vand.u32 2147483648, %v418_v44  ;;  %v428_v60 = vand.u32 2147483647, %v418_v44 }
 0x19f   : > { %v431_v61 = vor.u32 1.1754944e-38, %v430_v58  ;;  %vm429_vm5 = vcmp.eq.f32.partialorder %v428_v60, 8.507059e+37 }
 0x1a3   : > { %v906_v49 = vpop.eup %905 }
 0x1a4   : > { %v420_v53 = vmul.f32 %v906_v49, %v418_v44  ;;  %vm425_vm3 = vweird.f32 %v906_v49 }
 0x1a5   : > { %v491_v32 = vpop.f32.mrf.mxu1  ;;  %vm426_vm4 = vmor %vm424_vm2, %vm425_vm3 }
 0x1a6   : > { %v494_v33 = vmul.f32 0.35355338, %v491_v32  ;;  %v421_v54 = vsub.f32 1.0, %v420_v53  ;;  %v644_v32 = vld [vmem:[%s1208_s3 + $0x8] sm:$0xff] }
 0x1a7   : > { %669 = vmatpush.msra.mxu1 %v644_v32 }
 0x1a8   : > { %v495_v35 = vsel %vm324_vm1, %v494_v33, -inf  ;;  %v422_v57 = vmul.f32 %v906_v49, %v421_v54 }
 0x1a9   : > { %496 = vmax.xlane.f32.xlu1 %v495_v35 }
 0x1aa   : > { %v423_v59 = vadd.f32 %v906_v49, %v422_v57 }
 0x1ab   : > { %v453_v0 = vpop.f32.mrf.mxu3 }
 0x1ac   : > { %v427_v62 = vsel %vm426_vm4, %v906_v49, %v423_v59  ;;  %vm641_vm4 = vcmask 195584  }
 0x1ad   : > { %v432_v63 = vsel %vm429_vm5, %v431_v61, %v427_v62  ;;  %vm651_vm5 = vcmask 261120  }
 0x1ae   : > { %v456_v1 = vmul.f32 %v453_v0, %v432_v63 }
 0x1b1   : > { %581 = vmax.xlane.f32.xlu1 %v580_v37 }
 0x1b9   : > { %332 = vadd.xlane.f32.xlu1 %v331_v38 }
 0x21c   : > { %v497_v43 = vpop.xlane.xlu1 %496 }
 0x21d   : > { %v498_v45 = vsub.f32 %v494_v33, %v497_v43  ;;  %v643_v33 = vld [vmem:[%s1208_s3] sm:$0xff] }
 0x21e   : > { %670 = vmatpush.msra.mxu1 %v643_v33 }
 0x21f   : > { %v499_v46 = vmul.f32 1.442695, %v498_v45 }
 0x221   : > { %907 = vpow2.f32 %v499_v46 }
 0x224   : > { %v582_v47 = vpop.xlane.xlu1 %581 }
 0x225   : > { %v583_v48 = vsub.f32 %v579_v36, %v582_v47 }
 0x227   : > { %v908_v50 = vpop.eup %907  ;;  %v584_v51 = vmul.f32 1.442695, %v583_v48 }
 0x228   : > { %824 = vmatmul.msk.f32.vlgmr.msrb.gmra.mxu3 %vm324_vm1, %v908_v50  ;;  %v501_v52 = vsel %vm324_vm1, %v908_v50, 0.0 }
 0x229   : > { %909 = vpow2.f32 %v584_v51  ;;  %502 = vadd.xlane.f32.xlu2 %v501_v52 }
 0x22c   : > { %v333_v30 = vpop.xlane.xlu1 %332 }
 0x22d   : > { %v345_v39 = vand.u32 2147483648, %v333_v30  ;;  %vm339_vm15 = vweird.f32 %v333_v30  ;;  %v343_v40 = vand.u32 2147483647, %v333_v30 }
 0x22f   : > { %v910_v55 = vpop.eup %909  ;;  %v346_v42 = vor.u32 1.1754944e-38, %v345_v39  ;;  %vm344_vm3 = vcmp.eq.f32.partialorder %v343_v40, 8.507059e+37 }
 0x230   : > { %833 = vmatmul.msk.f32.vlgmr.msrb.gmra.mxu2 %vm324_vm1, %v910_v55  ;;  %v586_v56 = vsel %vm324_vm1, %v910_v55, 0.0 }
 0x231   : > { %587 = vadd.xlane.f32.xlu0 %v586_v56 }
 0x241   : > { %628 = vrot.lane.b32.xlu2 %v456_v1, %s997_s25 }
 0x29c   : > { %v503_v2 = vpop.xlane.xlu2 %502 }
 0x29d   : > { %911 = vrcp.f32 %v503_v2  ;;  %v515_v7 = vand.u32 2147483648, %v503_v2  ;;  %v513_v9 = vand.u32 2147483647, %v503_v2  ;;  %vm509_vm7 = vweird.f32 %v503_v2 }
 0x29f   : > { %v516_v12 = vor.u32 1.1754944e-38, %v515_v7  ;;  %vm514_vm9 = vcmp.eq.f32.partialorder %v513_v9, 8.507059e+37 }
 0x2a3   : > { %v912_v3 = vpop.eup %911 }
 0x2a4   : > { %v505_v4 = vmul.f32 %v912_v3, %v503_v2  ;;  %v588_v5 = vpop.xlane.xlu0 %587  ;;  %vm510_vm6 = vweird.f32 %v912_v3  ;;  %v629_v44 = vpop.permute.xlu2 %628 }
 0x2a5   : > { %913 = vrcp.f32 %v588_v5  ;;  %vm511_vm8 = vmor %vm509_vm7, %vm510_vm6  ;;  %v600_v19 = vand.u32 2147483648, %v588_v5  ;;  %v598_v21 = vand.u32 2147483647, %v588_v5  ;;  %vm594_vm11 = vweird.f32 %v588_v5 }
 0x2a6   : > { %v506_v6 = vsub.f32 1.0, %v505_v4  ;;  %915 = vrcp.f32 %v333_v30 }
 0x2a7   : > { %v601_v23 = vor.u32 1.1754944e-38, %v600_v19  ;;  %vm599_vm13 = vcmp.eq.f32.partialorder %v598_v21, 8.507059e+37 }
 0x2a8   : > { %v507_v8 = vmul.f32 %v912_v3, %v506_v6 }
 0x2aa   : > { %v508_v10 = vadd.f32 %v912_v3, %v507_v8 }
 0x2ab   : > { %v914_v11 = vpop.eup %913  ;;  %v538_v16 = vpop.f32.mrf.mxu3 }
 0x2ac   : > { %v590_v13 = vmul.f32 %v914_v11, %v588_v5  ;;  %v512_v14 = vsel %vm511_vm8, %v912_v3, %v508_v10  ;;  %vm595_vm10 = vweird.f32 %v914_v11  ;;  %v916_v34 = vpop.eup %915 }
 0x2ad   : > { %v517_v15 = vsel %vm514_vm9, %v516_v12, %v512_v14  ;;  %vm596_vm12 = vmor %vm594_vm11, %vm595_vm10  ;;  %v335_v35 = vmul.f32 %v916_v34, %v333_v30  ;;  %vm340_vm14 = vweird.f32 %v916_v34 }
 0x2ae   : > { %v591_v17 = vsub.f32 1.0, %v590_v13  ;;  %v541_v18 = vmul.f32 %v538_v16, %v517_v15  ;;  %vm341_vm2 = vmor %vm339_vm15, %vm340_vm14 }
 0x2af   : > { %v336_v36 = vsub.f32 1.0, %v335_v35 }
 0x2b0   : > { %632 = vrot.lane.b32.xlu0 %v541_v18, %s998_s27  ;;  %v592_v20 = vmul.f32 %v914_v11, %v591_v17  ;;  %s688_s27 = scalar_lea.hbm %s1210_s5, %s836_s17 }
 0x2b1   : > { %v337_v37 = vmul.f32 %v916_v34, %v336_v36  ;;  %s692_s10 = sshll.u32 %s688_s27, 4  ;;  %s693_s10 = int_to_ptr.hbm [resolvable:$true] %s692_s10 }
 0x2b2   : > { %v593_v22 = vadd.f32 %v914_v11, %v592_v20  ;;  %s931_s21 = sshra.s32 %s693_s10, 4  ;;  %s932_s21 = int_to_ptr.hbm [resolvable:$true] %s931_s21 }
 0x2b3   : > { %v623_v26 = vpop.f32.mrf.mxu2  ;;  %v338_v38 = vadd.f32 %v916_v34, %v337_v37  ;;  %s933_s12 = scalar_lea.hbm %s932_s21, 8  ;;  %p938_p1 = scmp.lt.s32.totalorder %s932_s21, %s1210_s5 }
 0x2b4   : > { %v597_v24 = vsel %vm596_vm12, %v914_v11, %v593_v22  ;;  %p934_p12 = scmp.ne.s32.totalorder %s932_s21, %s933_s12  ;;  %p939_p2 = scmp.lt.s32.totalorder %s937_s16, %s933_s12 }
 0x2b5   : > { %v602_v25 = vsel %vm599_vm13, %v601_v23, %v597_v24  ;;  %v342_v41 = vsel %vm341_vm2, %v916_v34, %v338_v38 }
 0x2b6   : > { %v626_v27 = vmul.f32 %v623_v26, %v602_v25  ;;  %v347_v43 = vsel %vm344_vm3, %v346_v42, %v342_v41  ;;  %p935_p13 = pnand %p934_p12, %p1070_p4  ;;  %p940_p3 = por %p939_p2, %p938_p1 }
 0x2b7   : > { %v371_v45 = vmul.f32 %v1135_v31, %v347_v43  ;;  %v900_v31 = vld [vmem:[%s1209_s4] ss:$0 sm:$0xff] }
 0x2b8   : > { %636 = vrot.lane.b32.xlu1 %v626_v27, %s999_s29  ;;  %p936_p0 = pneg %p935_p13 }
 0x2b9   : > { %v639_v47 = vsel %vm293_vm0, %v371_v45, %v629_v44 }
 0x2ba   : > { %p941_p5 = pnand %p940_p3, %p936_p0 }
 0x322   : > { %v633_v46 = vpop.permute.xlu0 %632 }
 0x323   : > { %v640_v48 = vsel %vm324_vm1, %v639_v47, %v633_v46 }
 0x32a   : > { %v637_v49 = vpop.permute.xlu1 %636 }
 0x32b   : > { %v642_v50 = vsel %vm641_vm4, %v640_v48, %v637_v49 }
 0x32c   : > { %834 = vmatmul.msk.f32.vlgmr.msra.gmra.mxu1 %vm651_vm5, %v642_v50 }
 0x3a9   : > { %v672_v51 = vpop.f32.mrf.mxu1 }
 0x3aa   : > { %v673_v52 = vadd.f32 %v900_v31, %v672_v51 }
 0x3ac   : > { %675 = vst.msk [vmem:[%s269_s8] sm:$0xff] %vm651_vm5, %v673_v52 }
 0x3ad   : > { %944 = shalt.err (!%p941_p5)
}
 0x3ae   : > { %842 = dma.vmem_to_hbm [thread:$0]  (%p1070_p4), %s691_s9, 128, %s693_s10, %s677_s11  }
 0x3af PF: > { %p848_p6 = scmp.ge.s32.totalorder %s995_s23, 2  ;;  %s704_s15 = sand.u32 1, %s975_s18  }
 0x3b0   : > { %s705_s25 = scalar_lea.sflag [#allocation3], %s704_s15 }
 0x3b1   : > { %p845_p7 = pnand %p848_p6, %p1077_p8 }
 0x3b3   : > { %p846_p9 = pneg %p845_p7 }
 0x3b5   : > { %970 = dma.done.wait (%p846_p9), %s705_s25, 128  }
 0x3b6   : > { %972 = vsyncadd (%p846_p9), %s705_s25, 4294967168  ;;  %s18_s23 = sadd.s32 1, %s995_s23   ;;  %s1213_s18 = smov %s979_s19 }
 0x3b7   : > { %p15_p10 = scmp.ge.s32.totalorder %s18_s23, 4   ;;  %s1214_s19 = smov %s983_s20 }
 0x3b8   : > { %s1215_s20 = smov %s1083_s6  ;;  %s1216_s21 = smov %s991_s22 }
 0x3b9   : > { %s1217_s22 = smov %s1219_s26  ;;  %17 = sbr.rel (!%p15_p10) target bundleno = 4 (0x4), region = 90 }
 0x3be   :  { %711 = vsyncpa [#allocation3], 1 }
 0x3bf   :  { %713 = vsyncpa [#allocation3 + $0x1], 1 }

</bundles_post_ra>
